<compile_context>
chip_gen: v5e
topology: v5e:2x2
jax: 0.10.0
libtpu: 0.0.40
codegen_flags: <defaults>
</compile_context>

<pallas_src>
import jax
import jax.numpy as jnp
from jax.experimental import pallas as pl
from jax.experimental.pallas import tpu as pltpu


def _round_up(x: int, m: int) -> int:
    return ((x + m - 1) // m) * m


def _device_kind() -> str:
    try:
        return jax.devices()[0].device_kind.lower()
    except Exception:
        return ""


def _make_kernel(int8_mxu: bool):
    """Build the kernel body + accumulator dtype for the selected MXU path."""
    if int8_mxu:
        acc_dtype = jnp.int32

        def _dot(a, b):
            # Native int8 MXU path, exact int32 accumulation (CUTLASS numerics).
            return jnp.dot(a, b, preferred_element_type=jnp.int32)
    else:
        acc_dtype = jnp.float32

        def _dot(a, b):
            # v7x has no integer MXU: int8 is exactly representable in bf16 and
            # int8*int8 products / K-sums stay exact in f32 MXU accumulation.
            return jnp.dot(a.astype(jnp.bfloat16), b.astype(jnp.bfloat16),
                           preferred_element_type=jnp.float32)

    def kernel(a_ref, b_ref, sa_ref, sb_ref, o_ref, acc_ref):
        # K-reduction axis is grid axis 2 ("arbitrary"); resident accumulator.
        @pl.when(pl.program_id(2) == 0)
        def _():
            acc_ref[...] = jnp.zeros_like(acc_ref)

        acc_ref[...] += _dot(a_ref[...], b_ref[...])

        @pl.when(pl.program_id(2) == pl.num_programs(2) - 1)
        def _():
            # Per-row (tm,1) and per-column (1,tn) scales, applied exactly once
            # per output element in the epilogue.
            scaled = (acc_ref[...].astype(jnp.float32)
                      * sb_ref[...]) * sa_ref[...]
            o_ref[...] = scaled.astype(o_ref.dtype)

    return kernel, acc_dtype


def _build_call(kernel, acc_dtype, grid, tm, tn, tk, Mp, Np, Kp, out_dtype,
                vmem_limit_bytes, buffer_count):
    ab_kwargs = {}
    if buffer_count is not None:
        ab_kwargs = dict(pipeline_mode=pl.Buffered(buffer_count))
    in_specs = [
        pl.BlockSpec((tm, tk), lambda i, j, k: (i, k), **ab_kwargs),   # A tile
        pl.BlockSpec((tk, tn), lambda i, j, k: (k, j), **ab_kwargs),   # B tile
        pl.BlockSpec((tm, 1), lambda i, j, k: (i, 0)),                 # scale_a
        pl.BlockSpec((1, tn), lambda i, j, k: (0, j)),                 # scale_b
    ]
    out_elem_bytes = jnp.dtype(out_dtype).itemsize
    cost = pl.CostEstimate(
        flops=2 * Mp * Np * Kp,
        transcendentals=0,
        bytes_accessed=(Mp * Kp + Kp * Np            # int8 A, B
                        + 4 * (Mp + Np)              # f32 scales
                        + out_elem_bytes * Mp * Np))  # output
    return pl.pallas_call(
        kernel,
        out_shape=jax.ShapeDtypeStruct((Mp, Np), out_dtype),
        grid_spec=pltpu.PrefetchScalarGridSpec(
            num_scalar_prefetch=0,
            grid=grid,
            in_specs=in_specs,
            out_specs=pl.BlockSpec((tm, tn), lambda i, j, k: (i, j)),
            scratch_shapes=[pltpu.VMEM((tm, tn), acc_dtype)],
        ),
        compiler_params=pltpu.CompilerParams(
            dimension_semantics=("parallel", "parallel", "arbitrary"),
            vmem_limit_bytes=vmem_limit_bytes),
        cost_estimate=cost,
    )


def cutlass_scaled_mm(a, b, scale_a, scale_b, out_dtype=jnp.bfloat16,
                      *, tm=None, tn=None, tk=None):
    M, K = a.shape
    Kb, N = b.shape
    assert K == Kb, "contraction dims must match"

    kind = _device_kind()
    is_v7 = "v7" in kind
    is_v5 = "v5" in kind
    int8_mxu = not is_v7      # v5e/v6e: native int8 MXU; v7x: bf16/fp8 only.

    # Generation-aware defaults: v5e MXU is 128-wide (keep tn modest, stay well
    # under scoped-VMEM defaults); v6e/v7x want >=256-wide lane-dense N tiles.
    d_tm, d_tn, d_tk = (256, 256, 512) if is_v5 else (256, 512, 1024)
    tm = d_tm if tm is None else tm
    tn = d_tn if tn is None else tn
    tk = d_tk if tk is None else tk

    # Clamp tiles to the (alignment-rounded) problem, then zero-pad M/N/K to a
    # whole number of tiles — padding once in HBM beats shrinking the tiles.
    tm = min(tm, _round_up(M, 32))     # 32: int8 sublane packing
    tn = min(tn, _round_up(N, 128))    # 128: lane width
    tk = min(tk, _round_up(K, 128))
    Mp, Np, Kp = _round_up(M, tm), _round_up(N, tn), _round_up(K, tk)

    scale_a = jnp.broadcast_to(
        jnp.asarray(scale_a, jnp.float32).reshape(-1, 1), (M, 1))
    scale_b = jnp.broadcast_to(
        jnp.asarray(scale_b, jnp.float32).reshape(1, -1), (1, N))

    if (Mp, Kp) != (M, K):
        a = jnp.pad(a, ((0, Mp - M), (0, Kp - K)))
    if (Kp, Np) != (K, N):
        b = jnp.pad(b, ((0, Kp - K), (0, Np - N)))
    if Mp != M:
        scale_a = jnp.pad(scale_a, ((0, Mp - M), (0, 0)))
    if Np != N:
        scale_b = jnp.pad(scale_b, ((0, 0), (0, Np - N)))

    kernel, acc_dtype = _make_kernel(int8_mxu)
    grid = (Mp // tm, Np // tn, Kp // tk)
    # v7x: 64 MiB physical VMEM (32 MiB scoped default); v5e/v6e: 128 MiB.
    vmem_limit_bytes = (32 << 20) if is_v7 else (64 << 20)

    args = (a, b, scale_a, scale_b)
    try:
        out = _build_call(kernel, acc_dtype, grid, tm, tn, tk, Mp, Np, Kp,
                          out_dtype, vmem_limit_bytes, buffer_count=3)(*args)
    except Exception:
        # Fallback if deep input buffering (pipeline_mode) is unsupported on
        # this JAX/Mosaic version: default double-buffering is still correct.
        out = _build_call(kernel, acc_dtype, grid, tm, tn, tk, Mp, Np, Kp,
                          out_dtype, vmem_limit_bytes, buffer_count=None)(*args)

    if (Mp, Np) != (M, N):
        out = out[:M, :N]
    return out


class CutlassLayer:
    """JAX mirror of the PyTorch CutlassLayer module (forward only)."""

    def __init__(self, b, scale_a, scale_b, out_dtype):
        self.b = b
        self.scale_a = scale_a
        self.scale_b = scale_b
        self.out_dtype = out_dtype

    def __call__(self, a):
        return cutlass_scaled_mm(a, self.b, self.scale_a, self.scale_b,
                                 self.out_dtype)


if __name__ == "__main__":
    def ref_mm(a, b, sa, sb, out_dtype):
        acc = jnp.dot(a.astype(jnp.int32), b.astype(jnp.int32))
        return (sa * acc.astype(jnp.float32) * sb).astype(out_dtype)

    key = jax.random.PRNGKey(0)

    # Case 1: small, tile-friendly shapes through the CutlassLayer wrapper.
    M, K, N = 32, 256, 128
    ka, kb, ksa, ksb, key = jax.random.split(key, 5)
    a = jax.random.randint(ka, (M, K), -5, 6, dtype=jnp.int32).astype(jnp.int8)
    b = jax.random.randint(kb, (K, N), -5, 6, dtype=jnp.int32).astype(jnp.int8)
    scale_a = jax.random.uniform(ksa, (M, 1), jnp.float32, 0.01, 0.1)
    scale_b = jax.random.uniform(ksb, (1, N), jnp.float32, 0.01, 0.1)

    layer = CutlassLayer(b, scale_a, scale_b, jnp.bfloat16)
    out = jax.block_until_ready(layer(a))
    ref = ref_mm(a, b, scale_a, scale_b, jnp.bfloat16)
    assert out.shape == (M, N) and out.dtype == jnp.bfloat16
    assert jnp.allclose(out.astype(jnp.float32), ref.astype(jnp.float32),
                        rtol=2e-2, atol=2e-2)

    # Case 2: ragged shapes + explicit small tiles to exercise the K-reduction
    # grid (accumulator carry) and the M/N/K padding path.
    M2, K2, N2 = 48, 384, 200
    ka, kb, ksa, ksb, key = jax.random.split(key, 5)
    a2 = jax.random.randint(ka, (M2, K2), -5, 6, dtype=jnp.int32).astype(jnp.int8)
    b2 = jax.random.randint(kb, (K2, N2), -5, 6, dtype=jnp.int32).astype(jnp.int8)
    sa2 = jax.random.uniform(ksa, (M2, 1), jnp.float32, 0.01, 0.1)
    sb2 = jax.random.uniform(ksb, (1, N2), jnp.float32, 0.01, 0.1)
    out2 = jax.block_until_ready(
        cutlass_scaled_mm(a2, b2, sa2, sb2, jnp.bfloat16, tm=32, tn=128, tk=128))
    ref2 = ref_mm(a2, b2, sa2, sb2, jnp.bfloat16)
    assert out2.shape == (M2, N2) and out2.dtype == jnp.bfloat16
    assert jnp.allclose(out2.astype(jnp.float32), ref2.astype(jnp.float32),
                        rtol=2e-2, atol=2e-2)

    print("KERNEL_OK")
</pallas_src>

<mosaic_0001>
module attributes {stable_mosaic.version = 11 : i64} {
  func.func @kernel(%arg0: i32, %arg1: i32, %arg2: i32, %arg3: memref<32x256xi8, #tpu.memory_space<vmem>>, %arg4: memref<256x128xi8, #tpu.memory_space<vmem>>, %arg5: memref<32x1xf32, #tpu.memory_space<vmem>>, %arg6: memref<1x128xf32, #tpu.memory_space<vmem>>, %arg7: memref<32x128xbf16, #tpu.memory_space<vmem>>, %arg8: memref<32x128xi32, #tpu.memory_space<vmem>>) attributes {dimension_semantics = [#tpu.dimension_semantics<parallel>, #tpu.dimension_semantics<parallel>, #tpu.dimension_semantics<arbitrary>], iteration_bounds = array<i64: 1, 1, 1>, scalar_prefetch = 0 : i64, scratch_operands = 1 : i64, tpu.core_type = #tpu.core_type<tc>, window_params = [{transform_indices = @transform_0, window_bounds = array<i64: 32, 256>}, {transform_indices = @transform_1, window_bounds = array<i64: 256, 128>}, {transform_indices = @transform_2, window_bounds = array<i64: 32, 1>}, {transform_indices = @transform_3, window_bounds = array<i64: 1, 128>}, {transform_indices = @transform_4, window_bounds = array<i64: 32, 128>}]} {
    %c0_i32 = arith.constant 0 : i32
    %0 = arith.cmpi eq, %arg2, %c0_i32 : i32
    %1 = arith.extui %0 : i1 to i32
    %c0_i32_0 = arith.constant 0 : i32
    %2 = arith.cmpi ne, %1, %c0_i32_0 : i32
    scf.if %2 {
      %c0_i32_10 = arith.constant 0 : i32
      %12 = vector.broadcast %c0_i32_10 : i32 to vector<32x128xi32>
      %c0_11 = arith.constant 0 : index
      %c0_12 = arith.constant 0 : index
      %13 = vector.load %arg8[%c0_11, %c0_12] : memref<32x128xi32, #tpu.memory_space<vmem>>, vector<32x128xi32>
      tpu.vector_store %arg8[%c0_11, %c0_12], %12 {strides = array<i32>} : memref<32x128xi32, #tpu.memory_space<vmem>>, vector<32x128xi32>,
    } else {
    }
    %c0 = arith.constant 0 : index
    %c0_1 = arith.constant 0 : index
    %3 = vector.load %arg8[%c0, %c0_1] : memref<32x128xi32, #tpu.memory_space<vmem>>, vector<32x128xi32>
    %c0_2 = arith.constant 0 : index
    %c0_3 = arith.constant 0 : index
    %4 = vector.load %arg3[%c0_2, %c0_3] : memref<32x256xi8, #tpu.memory_space<vmem>>, vector<32x256xi8>
    %c0_4 = arith.constant 0 : index
    %c0_5 = arith.constant 0 : index
    %5 = vector.load %arg4[%c0_4, %c0_5] : memref<256x128xi8, #tpu.memory_space<vmem>>, vector<256x128xi8>
    %cst = arith.constant dense<0> : vector<32x128xi32>
    %6 = tpu.matmul %4, %5, %cst {dimension_numbers = #tpu.dot_dimension_numbers<[1], [0], [0], [1], [0, 0, 1, 1], [], []>} : vector<32x256xi8>, vector<256x128xi8>, vector<32x128xi32> -> vector<32x128xi32>
    %7 = arith.addi %3, %6 : vector<32x128xi32>
    %c0_6 = arith.constant 0 : index
    %c0_7 = arith.constant 0 : index
    %8 = vector.load %arg8[%c0_6, %c0_7] : memref<32x128xi32, #tpu.memory_space<vmem>>, vector<32x128xi32>
    tpu.vector_store %arg8[%c0_6, %c0_7], %7 {strides = array<i32>} : memref<32x128xi32, #tpu.memory_space<vmem>>, vector<32x128xi32>,
    %c0_i32_8 = arith.constant 0 : i32
    %9 = arith.cmpi eq, %arg2, %c0_i32_8 : i32
    %10 = arith.extui %9 : i1 to i32
    %c0_i32_9 = arith.constant 0 : i32
    %11 = arith.cmpi ne, %10, %c0_i32_9 : i32
    scf.if %11 {
      %c0_10 = arith.constant 0 : index
      %c0_11 = arith.constant 0 : index
      %12 = vector.load %arg8[%c0_10, %c0_11] : memref<32x128xi32, #tpu.memory_space<vmem>>, vector<32x128xi32>
      %13 = arith.sitofp %12 : vector<32x128xi32> to vector<32x128xf32>
      %c0_12 = arith.constant 0 : index
      %c0_13 = arith.constant 0 : index
      %14 = vector.load %arg6[%c0_12, %c0_13] : memref<1x128xf32, #tpu.memory_space<vmem>>, vector<1x128xf32>
      %15 = vector.broadcast %14 : vector<1x128xf32> to vector<32x128xf32>
      %16 = arith.mulf %13, %15 : vector<32x128xf32>
      %c0_14 = arith.constant 0 : index
      %c0_15 = arith.constant 0 : index
      %17 = vector.load %arg5[%c0_14, %c0_15] : memref<32x1xf32, #tpu.memory_space<vmem>>, vector<32x1xf32>
      %18 = vector.broadcast %17 : vector<32x1xf32> to vector<32x128xf32>
      %19 = arith.mulf %16, %18 : vector<32x128xf32>
      %20 = arith.truncf %19 : vector<32x128xf32> to vector<32x128xbf16>
      %c0_16 = arith.constant 0 : index
      %c0_17 = arith.constant 0 : index
      %21 = vector.load %arg7[%c0_16, %c0_17] : memref<32x128xbf16, #tpu.memory_space<vmem>>, vector<32x128xbf16>
      tpu.vector_store %arg7[%c0_16, %c0_17], %20 {strides = array<i32>} : memref<32x128xbf16, #tpu.memory_space<vmem>>, vector<32x128xbf16>,
    } else {
    }
    return
  }
  func.func @transform_0(%arg0: i32, %arg1: i32, %arg2: i32) -> (i32, i32) {
    %c0_i32 = arith.constant 0 : i32
    return %arg0, %arg2 : i32, i32
  }
  func.func @transform_1(%arg0: i32, %arg1: i32, %arg2: i32) -> (i32, i32) {
    %c0_i32 = arith.constant 0 : i32
    return %arg2, %arg1 : i32, i32
  }
  func.func @transform_2(%arg0: i32, %arg1: i32, %arg2: i32) -> (i32, i32) {
    %c0_i32 = arith.constant 0 : i32
    %c0_i32_0 = arith.constant 0 : i32
    return %arg0, %c0_i32 : i32, i32
  }
  func.func @transform_3(%arg0: i32, %arg1: i32, %arg2: i32) -> (i32, i32) {
    %c0_i32 = arith.constant 0 : i32
    %c0_i32_0 = arith.constant 0 : i32
    return %c0_i32, %arg1 : i32, i32
  }
  func.func @transform_4(%arg0: i32, %arg1: i32, %arg2: i32) -> (i32, i32) {
    %c0_i32 = arith.constant 0 : i32
    return %arg0, %arg1 : i32, i32
  }
}

</mosaic_0001>

<bundles_post_ra>
// kernel: tpu_custom_call.1
= control target key start
LH: loop header
LB: loop body
LE: loop exit
PB: predicated region body
PF: predicated region fallthrough
CT: control target
= control target key end

     0   :  { %9 = vsyncpa [#allocation4], 0  ;;  %s298_s0 = inlined_call_operand.vmem [shape: s8[32,256], index: 0, kind: input, shape index: {}]   ;;  %s299_s1 = inlined_call_operand.hbm [shape: s8[256,128], index: 1, kind: input, shape index: {}]   ;;  %s300_s2 = inlined_call_operand.vmem [shape: f32[32,1], index: 2, kind: input, shape index: {}]   ;;  %s301_s3 = inlined_call_operand.vmem [shape: f32[1,128], index: 3, kind: input, shape index: {}]   ;;  %s302_s4 = inlined_call_operand.hbm [shape: bf16[32,128], index: 4, kind: output, shape index: {}]  }
   0x1   :  { %10 = vsyncpa [#allocation5], 0  ;;  %s17_s17 = sshll.u32 %s299_s1, 4  ;;  %s239_s18 = smov [#allocation3]   ;;  %s18_s17 = int_to_ptr.hbm [resolvable:$true] %s17_s17 }
   0x2   :  { %s19_s19 = sshll.u32 %s239_s18, 4  ;;  %s240_s20 = smov 128   ;;  %s20_s19 = int_to_ptr.vmem [resolvable:$true] %s19_s19 }
   0x3   :  { %s241_s21 = smov 8  }
   0x4   :  { %25 = dma.hbm_to_vmem [thread:$0]  %s18_s17, 1024, %s20_s19, [#allocation4], %s240_s20, %s240_s20, %s241_s21  }
   0x5   :  { %235 = dma.done.wait [#allocation4], 1024  }
   0x6   :  { %236 = vsyncadd [#allocation4], 4294966272  ;;  %v242_v0 = vmov 0   ;;  %v51_v1 = vld [vmem:[#allocation3 + $0x18] sm:$0xff]  ;;  %v50_v3 = vld [vmem:[#allocation3 + $0x10] sm:$0xff]  ;;  %s153_s10 = sshll.u32 %s302_s4, 4  ;;  %s154_s10 = int_to_ptr.hbm [resolvable:$true] %s153_s10 }
   0x7   :  { %185 = vset.pattern.permute.xlu1 %v242_v0  ;;  %184 = vset.pattern.permute.xlu0 %v242_v0  ;;  %v55_v2 = vld [vmem:[#allocation3 + $0x38] sm:$0xff]  ;;  %v54_v4 = vld [vmem:[#allocation3 + $0x30] sm:$0xff]  ;;  %v111_v6 = vld [vmem:[%s300_s2] sm:$0xff]  ;;  %s244_s11 = smov 64   ;;  %s245_s12 = smov 4  }
   0x8   :  { %56 = vmatpush.s8.msra.mxu0 %v51_v1  ;;  %70 = vmatpush.s8.msra.mxu1 %v55_v2  ;;  %v113_v5 = vld [vmem:[%s300_s2 + $0x10] sm:$0xff]  ;;  %v49_v7 = vld [vmem:[#allocation3 + $0x8] sm:$0xff]  ;;  %v114_v9 = vld [vmem:[%s300_s2 + $0x18] sm:$0xff] }
   0x9   :  { %127 = vperm.xlu1 %185, %v113_v5   ;;  %117 = vperm.xlu0 %184, %v111_v6   ;;  %v53_v8 = vld [vmem:[#allocation3 + $0x28] sm:$0xff]  ;;  %v48_v11 = vld [vmem:[#allocation3] sm:$0xff] }
   0xa   :  { %v112_v10 = vld [vmem:[%s300_s2 + $0x8] sm:$0xff]  ;;  %v52_v12 = vld [vmem:[#allocation3 + $0x20] sm:$0xff] }
   0xb   :  { %v46_v13 = vld [vmem:[%s298_s0] sm:$0xff]  ;;  %v47_v14 = vld [vmem:[%s298_s0 + $0x8] sm:$0xff]  ;;  %s243_s0 = smov [#allocation6]  }
   0xc   :  { %57 = vmatpush.s8.msra.mxu0 %v50_v3  ;;  %71 = vmatpush.s8.msra.mxu1 %v54_v4  ;;  %v186_v20 = vld [vmem:[%s301_s3] ss:$0 sm:$0xff]  ;;  %s151_s3 = sshll.u32 %s243_s0, 4  ;;  %s152_s3 = int_to_ptr.vmem [resolvable:$true] %s151_s3 }
  0x10   :  { %58 = vmatpush.s8.msra.mxu0 %v49_v7  ;;  %72 = vmatpush.s8.msra.mxu1 %v53_v8 }
  0x11   :  { %132 = vperm.xlu1 %185, %v114_v9   ;;  %122 = vperm.xlu0 %184, %v112_v10  }
  0x14   :  { %59 = vmatpush.s8.msra.mxu0 %v48_v11  ;;  %73 = vmatpush.s8.msra.mxu1 %v52_v12 }
  0x17   :  { %60 = vmatmul.s8.vlgmr.msra.gmra.mxu0 %v46_v13  ;;  %74 = vmatmul.s8.vlgmr.msra.gmra.mxu1 %v47_v14 }
  0x7b   :  { %v118_v15 = vpop.permute.xlu0 %117  ;;  %v128_v24 = vpop.permute.xlu1 %127 }
  0x83   :  { %v123_v27 = vpop.permute.xlu0 %122  ;;  %v133_v42 = vpop.permute.xlu1 %132 }
  0x8a   :  { %v61_v16 = vpop.s32.mrf.mxu0  ;;  %v75_v17 = vpop.s32.mrf.mxu1 }
  0x8b   :  { %v76_v18 = vadd.s32 %v75_v17, %v61_v16 }
  0x8d   :  { %v99_v19 = vcvt.s32.f32 %v76_v18 }
  0x8e   :  { %v63_v21 = vpop.s32.mrf.mxu0  ;;  %v77_v22 = vpop.s32.mrf.mxu1 }
  0x8f   :  { %v78_v23 = vadd.s32 %v77_v22, %v63_v21  ;;  %v107_v25 = vmul.f32 %v186_v20, %v99_v19 }
  0x91   :  { %v100_v26 = vcvt.s32.f32 %v78_v23  ;;  %v135_v32 = vmul.f32 %v118_v15, %v107_v25 }
  0x92   :  { %v65_v28 = vpop.s32.mrf.mxu0  ;;  %v79_v29 = vpop.s32.mrf.mxu1 }
  0x93   :  { %v80_v30 = vadd.s32 %v79_v29, %v65_v28  ;;  %v108_v31 = vmul.f32 %v186_v20, %v100_v26 }
  0x95   :  { %v101_v33 = vcvt.s32.f32 %v80_v30  ;;  %v136_v34 = vmul.f32 %v123_v27, %v108_v31 }
  0x96   :  { %v67_v35 = vpop.s32.mrf.mxu0  ;;  %v81_v36 = vpop.s32.mrf.mxu1 }
  0x97   :  { %v169_v37 = vpack.c.bf16 %v136_v34, %v135_v32  ;;  %v82_v38 = vadd.s32 %v81_v36, %v67_v35  ;;  %v109_v39 = vmul.f32 %v186_v20, %v101_v33 }
  0x99   :  { %170 = vst [vmem:[#allocation6] sm:$0xff] %v169_v37   ;;  %v102_v40 = vcvt.s32.f32 %v82_v38  ;;  %v137_v43 = vmul.f32 %v128_v24, %v109_v39 }
  0x9b   :  { %v110_v41 = vmul.f32 %v186_v20, %v102_v40 }
  0x9d   :  { %v138_v44 = vmul.f32 %v133_v42, %v110_v41 }
  0x9f   :  { %v174_v45 = vpack.c.bf16 %v138_v44, %v137_v43 }
  0xa1   :  { %176 = vst [vmem:[#allocation6 + $0x8] sm:$0xff] %v174_v45  }
  0xa2   :  { %159 = dma.vmem_to_hbm [thread:$0]  %s152_s3, 256, %s154_s10, [#allocation5], %s244_s11, %s244_s11, %s245_s12  }
  0xa3   :  { %237 = dma.done.wait [#allocation5], 256  }
  0xa4   :  { %238 = vsyncadd [#allocation5], 4294967040 }
  0xa5   :  { %164 = vsyncpa [#allocation4], 1 }
  0xa6   :  { %165 = vsyncpa [#allocation5], 1 }

</bundles_post_ra>
